<compile_context>
chip_gen: v7x
topology: tpu7x:2x2x1
jax: 0.10.0
libtpu: 0.0.40
codegen_flags: <defaults>
</compile_context>

<pallas_src>
import jax
import jax.numpy as jnp
from jax.experimental import pallas as pl
from jax.experimental.pallas import tpu as pltpu

H_PAD = 128        # hidden lane padding (fc1/fc2 widths <= 128)
ACT_PAD = 8        # narrow action-lane padding: small masked store beats a 128-wide slab
TILE_B_MAX = 1024  # max batch-tile rows; per-tile working set ~1 MiB << VMEM on all gens


def _round_up(x, m):
    return (x + m - 1) // m * m


def _choose_tiling(batch, tile_b_max=TILE_B_MAX):
    """Pick (tile_b, b_pad). tile_b is a multiple of 16 (bf16 sublane granule);
    tiny batches get a single minimal tile, large batches keep >=2 grid steps so
    dimension_semantics=('parallel',) can shard across v7x TensorCores."""
    b16 = _round_up(max(batch, 1), 16)
    if b16 <= 256:
        tile_b = b16                                    # single small tile
    else:
        tile_b = min(tile_b_max, _round_up((b16 + 1) // 2, 16))
        tile_b = max(tile_b, 128)
    b_pad = _round_up(b16, tile_b)
    return tile_b, b_pad


def _qnetwork_kernel(x_ref, w1_ref, w2_ref, w3_ref, b1_ref, b2_ref, b3_ref, out_ref):
    """One batch tile of the fused 3-layer MLP.

    x_ref:  [TB, S]  f32   states (cast to bf16 on-core)
    w1_ref: [S, H]   bf16
    w2_ref: [H, H]   bf16
    w3_ref: [H, A]   bf16   (A = action_size padded to 8 lanes)
    b1_ref: [1, H]   f32,  b2_ref: [1, H] f32,  b3_ref: [1, A] f32
    out_ref:[TB, A]  bf16   (narrow store; caller slices to action_size)
    """
    x = x_ref[...].astype(jnp.bfloat16)

    # fc1 + ReLU (bf16 MXU operands, f32 accumulate / bias / activation)
    h1 = jnp.dot(x, w1_ref[...], preferred_element_type=jnp.float32) + b1_ref[...]
    h1 = jnp.maximum(h1, 0.0).astype(jnp.bfloat16)

    # fc2 + ReLU
    h2 = jnp.dot(h1, w2_ref[...], preferred_element_type=jnp.float32) + b2_ref[...]
    h2 = jnp.maximum(h2, 0.0).astype(jnp.bfloat16)

    # fc3 (no activation) -> narrow (A-lane) bf16 store
    out = jnp.dot(h2, w3_ref[...], preferred_element_type=jnp.float32) + b3_ref[...]
    out_ref[...] = out.astype(out_ref.dtype)


def init_params(key, state_size, action_size, fc1_units=64, fc2_units=64):
    """torch.nn.Linear-style init: U(-1/sqrt(fan_in), 1/sqrt(fan_in)).
    Weights stored transposed as [in, out]; biases as [1, out]; f32 master copy."""
    def linear_init(k, fan_in, fan_out):
        kw, kb = jax.random.split(k)
        bound = 1.0 / jnp.sqrt(jnp.float32(fan_in))
        w = jax.random.uniform(kw, (fan_in, fan_out), jnp.float32, -bound, bound)
        b = jax.random.uniform(kb, (1, fan_out), jnp.float32, -bound, bound)
        return w, b

    k1, k2, k3 = jax.random.split(key, 3)
    w1, b1 = linear_init(k1, state_size, fc1_units)
    w2, b2 = linear_init(k2, fc1_units, fc2_units)
    w3, b3 = linear_init(k3, fc2_units, action_size)
    return {"w1": w1, "b1": b1, "w2": w2, "b2": b2, "w3": w3, "b3": b3}


def pack_params(params):
    """Zero-pad hidden widths to 128 lanes and action width to 8 lanes, cast weights
    to bf16.  Each array stays separate and tile-aligned (no in-kernel slicing).
    Padded columns/rows are zero, so padded hidden lanes stay exactly 0 through
    bias + ReLU and contribute nothing downstream."""
    w1, b1 = params["w1"], params["b1"]
    w2, b2 = params["w2"], params["b2"]
    w3, b3 = params["w3"], params["b3"]
    state_size = w1.shape[0]
    action_size = w3.shape[1]
    assert max(w1.shape[1], w2.shape[0], w2.shape[1], w3.shape[0]) <= H_PAD
    # TODO(synk): generalize to hidden widths > 128 (would need K/N tiling of fc2/fc3).
    act_cols = _round_up(max(action_size, 1), ACT_PAD)

    def pad2(a, rows, cols):
        return jnp.pad(a, ((0, rows - a.shape[0]), (0, cols - a.shape[1])))

    return {
        "w1": pad2(w1, state_size, H_PAD).astype(jnp.bfloat16),
        "w2": pad2(w2, H_PAD, H_PAD).astype(jnp.bfloat16),
        "w3": pad2(w3, H_PAD, act_cols).astype(jnp.bfloat16),
        "b1": pad2(b1, 1, H_PAD).astype(jnp.float32),
        "b2": pad2(b2, 1, H_PAD).astype(jnp.float32),
        "b3": pad2(b3, 1, act_cols).astype(jnp.float32),
        "state_size": state_size,
        "action_size": action_size,
        "act_cols": act_cols,
    }


def qnetwork_forward(state, packed, *, tile_b_max=TILE_B_MAX):
    """state: [B, state_size] f32. Returns [B, action_size] f32."""
    w1, w2, w3 = packed["w1"], packed["w2"], packed["w3"]
    b1, b2, b3 = packed["b1"], packed["b2"], packed["b3"]
    s_dim = packed["state_size"]
    act_cols = packed["act_cols"]
    action_size = packed["action_size"]
    H = w2.shape[0]

    B = state.shape[0]
    tile_b, b_pad = _choose_tiling(B, tile_b_max)

    x = state.astype(jnp.float32)          # no-op for f32 inputs; kernel casts to bf16
    if b_pad != B:
        x = jnp.pad(x, ((0, b_pad - B), (0, 0)))

    grid = (b_pad // tile_b,)

    flops = 2 * b_pad * (s_dim * H + H * H + H * act_cols)
    bytes_accessed = (x.size * 4
                      + (w1.size + w2.size + w3.size) * 2
                      + (b1.size + b2.size + b3.size) * 4
                      + b_pad * act_cols * 2)

    out_padded = pl.pallas_call(
        _qnetwork_kernel,
        out_shape=jax.ShapeDtypeStruct((b_pad, act_cols), jnp.bfloat16),
        grid=grid,
        in_specs=[
            pl.BlockSpec((tile_b, s_dim), lambda i: (i, 0)),   # batch-tiled f32 states
            pl.BlockSpec(w1.shape, lambda i: (0, 0)),          # weights/biases: full-extent,
            pl.BlockSpec(w2.shape, lambda i: (0, 0)),          # constant index_map ->
            pl.BlockSpec(w3.shape, lambda i: (0, 0)),          # VMEM-resident, DMA'd once
            pl.BlockSpec(b1.shape, lambda i: (0, 0)),
            pl.BlockSpec(b2.shape, lambda i: (0, 0)),
            pl.BlockSpec(b3.shape, lambda i: (0, 0)),
        ],
        out_specs=pl.BlockSpec((tile_b, act_cols), lambda i: (i, 0)),
        compiler_params=pltpu.CompilerParams(
            dimension_semantics=("parallel",)),                # megacore-shardable batch axis
        cost_estimate=pl.CostEstimate(
            flops=flops, transcendentals=0, bytes_accessed=bytes_accessed),
    )(x, w1, w2, w3, b1, b2, b3)

    return out_padded[:B, :action_size].astype(jnp.float32)


def qnetwork_ref(state, params):
    """Pure-JAX f32 reference."""
    h1 = jnp.maximum(state @ params["w1"] + params["b1"], 0.0)
    h2 = jnp.maximum(h1 @ params["w2"] + params["b2"], 0.0)
    return h2 @ params["w3"] + params["b3"]


if __name__ == "__main__":
    state_size = 8
    action_size = 4
    batch = 2

    key = jax.random.PRNGKey(0)
    kparams, kstate, kstate_big = jax.random.split(key, 3)

    params = init_params(kparams, state_size, action_size)
    packed = pack_params(params)

    # Tiny inference-style batch (single 16-row tile; minimal padded work).
    state = jax.random.normal(kstate, (batch, state_size), dtype=jnp.float32)
    out = jax.block_until_ready(qnetwork_forward(state, packed))
    ref = qnetwork_ref(state, params)
    assert out.shape == (batch, action_size)
    assert jnp.allclose(out, ref, atol=3e-2, rtol=3e-2), "small-batch mismatch vs reference"

    # Larger, non-multiple-of-tile batch: exercises the multi-step parallel grid.
    big_state = jax.random.normal(kstate_big, (300, state_size), dtype=jnp.float32)
    out_big = jax.block_until_ready(qnetwork_forward(big_state, packed))
    ref_big = qnetwork_ref(big_state, params)
    assert out_big.shape == (300, action_size)
    assert jnp.allclose(out_big, ref_big, atol=3e-2, rtol=3e-2), "big-batch mismatch vs reference"

    print("KERNEL_OK")
</pallas_src>

<mosaic_0001>
module attributes {stable_mosaic.version = 11 : i64} {
  func.func @_qnetwork_kernel(%arg0: i32, %arg1: memref<16x8xf32, #tpu.memory_space<vmem>>, %arg2: memref<8x128xbf16, #tpu.memory_space<vmem>>, %arg3: memref<128x128xbf16, #tpu.memory_space<vmem>>, %arg4: memref<128x8xbf16, #tpu.memory_space<vmem>>, %arg5: memref<1x128xf32, #tpu.memory_space<vmem>>, %arg6: memref<1x128xf32, #tpu.memory_space<vmem>>, %arg7: memref<1x8xf32, #tpu.memory_space<vmem>>, %arg8: memref<16x8xbf16, #tpu.memory_space<vmem>>) attributes {dimension_semantics = [#tpu.dimension_semantics<parallel>], iteration_bounds = array<i64: 1>, scalar_prefetch = 0 : i64, scratch_operands = 0 : i64, tpu.core_type = #tpu.core_type<tc>, window_params = [{transform_indices = @transform_0, window_bounds = array<i64: 16, 8>}, {pipeline_mode = #tpu.pipeline_mode<synchronous>, transform_indices = @transform_1, window_bounds = array<i64: 8, 128>}, {pipeline_mode = #tpu.pipeline_mode<synchronous>, transform_indices = @transform_2, window_bounds = array<i64: 128, 128>}, {pipeline_mode = #tpu.pipeline_mode<synchronous>, transform_indices = @transform_3, window_bounds = array<i64: 128, 8>}, {pipeline_mode = #tpu.pipeline_mode<synchronous>, transform_indices = @transform_4, window_bounds = array<i64: 1, 128>}, {pipeline_mode = #tpu.pipeline_mode<synchronous>, transform_indices = @transform_5, window_bounds = array<i64: 1, 128>}, {pipeline_mode = #tpu.pipeline_mode<synchronous>, transform_indices = @transform_6, window_bounds = array<i64: 1, 8>}, {transform_indices = @transform_7, window_bounds = array<i64: 16, 8>}]} {
    %c0 = arith.constant 0 : index
    %c0_0 = arith.constant 0 : index
    %0 = vector.load %arg1[%c0, %c0_0] : memref<16x8xf32, #tpu.memory_space<vmem>>, vector<16x8xf32>
    %1 = arith.truncf %0 : vector<16x8xf32> to vector<16x8xbf16>
    %c0_1 = arith.constant 0 : index
    %c0_2 = arith.constant 0 : index
    %2 = vector.load %arg2[%c0_1, %c0_2] : memref<8x128xbf16, #tpu.memory_space<vmem>>, vector<8x128xbf16>
    %cst = arith.constant dense<0.000000e+00> : vector<16x128xf32>
    %3 = tpu.matmul %1, %2, %cst {dimension_numbers = #tpu.dot_dimension_numbers<[1], [0], [0], [1], [0, 0, 1, 1], [], []>} : vector<16x8xbf16>, vector<8x128xbf16>, vector<16x128xf32> -> vector<16x128xf32>
    %c0_3 = arith.constant 0 : index
    %c0_4 = arith.constant 0 : index
    %4 = vector.load %arg5[%c0_3, %c0_4] : memref<1x128xf32, #tpu.memory_space<vmem>>, vector<1x128xf32>
    %5 = vector.broadcast %4 : vector<1x128xf32> to vector<16x128xf32>
    %6 = arith.addf %3, %5 : vector<16x128xf32>
    %cst_5 = arith.constant 0.000000e+00 : f32
    %7 = vector.broadcast %cst_5 : f32 to vector<16x128xf32>
    %8 = arith.maximumf %6, %7 : vector<16x128xf32>
    %9 = arith.truncf %8 : vector<16x128xf32> to vector<16x128xbf16>
    %c0_6 = arith.constant 0 : index
    %c0_7 = arith.constant 0 : index
    %10 = vector.load %arg3[%c0_6, %c0_7] : memref<128x128xbf16, #tpu.memory_space<vmem>>, vector<128x128xbf16>
    %cst_8 = arith.constant dense<0.000000e+00> : vector<16x128xf32>
    %11 = tpu.matmul %9, %10, %cst_8 {dimension_numbers = #tpu.dot_dimension_numbers<[1], [0], [0], [1], [0, 0, 1, 1], [], []>} : vector<16x128xbf16>, vector<128x128xbf16>, vector<16x128xf32> -> vector<16x128xf32>
    %c0_9 = arith.constant 0 : index
    %c0_10 = arith.constant 0 : index
    %12 = vector.load %arg6[%c0_9, %c0_10] : memref<1x128xf32, #tpu.memory_space<vmem>>, vector<1x128xf32>
    %13 = vector.broadcast %12 : vector<1x128xf32> to vector<16x128xf32>
    %14 = arith.addf %11, %13 : vector<16x128xf32>
    %cst_11 = arith.constant 0.000000e+00 : f32
    %15 = vector.broadcast %cst_11 : f32 to vector<16x128xf32>
    %16 = arith.maximumf %14, %15 : vector<16x128xf32>
    %17 = arith.truncf %16 : vector<16x128xf32> to vector<16x128xbf16>
    %c0_12 = arith.constant 0 : index
    %c0_13 = arith.constant 0 : index
    %18 = vector.load %arg4[%c0_12, %c0_13] : memref<128x8xbf16, #tpu.memory_space<vmem>>, vector<128x8xbf16>
    %cst_14 = arith.constant dense<0.000000e+00> : vector<16x8xf32>
    %19 = tpu.matmul %17, %18, %cst_14 {dimension_numbers = #tpu.dot_dimension_numbers<[1], [0], [0], [1], [0, 0, 1, 1], [], []>} : vector<16x128xbf16>, vector<128x8xbf16>, vector<16x8xf32> -> vector<16x8xf32>
    %c0_15 = arith.constant 0 : index
    %c0_16 = arith.constant 0 : index
    %20 = vector.load %arg7[%c0_15, %c0_16] : memref<1x8xf32, #tpu.memory_space<vmem>>, vector<1x8xf32>
    %21 = vector.broadcast %20 : vector<1x8xf32> to vector<16x8xf32>
    %22 = arith.addf %19, %21 : vector<16x8xf32>
    %23 = arith.truncf %22 : vector<16x8xf32> to vector<16x8xbf16>
    %c0_17 = arith.constant 0 : index
    %c0_18 = arith.constant 0 : index
    %24 = vector.load %arg8[%c0_17, %c0_18] : memref<16x8xbf16, #tpu.memory_space<vmem>>, vector<16x8xbf16>
    tpu.vector_store %arg8[%c0_17, %c0_18], %23 {strides = array<i32>} : memref<16x8xbf16, #tpu.memory_space<vmem>>, vector<16x8xbf16>,
    return
  }
  func.func @transform_0(%arg0: i32) -> (i32, i32) {
    %c0_i32 = arith.constant 0 : i32
    %c0_i32_0 = arith.constant 0 : i32
    return %arg0, %c0_i32 : i32, i32
  }
  func.func @transform_1(%arg0: i32) -> (i32, i32) {
    %c0_i32 = arith.constant 0 : i32
    %c0_i32_0 = arith.constant 0 : i32
    %c0_i32_1 = arith.constant 0 : i32
    return %c0_i32, %c0_i32_0 : i32, i32
  }
  func.func @transform_2(%arg0: i32) -> (i32, i32) {
    %c0_i32 = arith.constant 0 : i32
    %c0_i32_0 = arith.constant 0 : i32
    %c0_i32_1 = arith.constant 0 : i32
    return %c0_i32, %c0_i32_0 : i32, i32
  }
  func.func @transform_3(%arg0: i32) -> (i32, i32) {
    %c0_i32 = arith.constant 0 : i32
    %c0_i32_0 = arith.constant 0 : i32
    %c0_i32_1 = arith.constant 0 : i32
    return %c0_i32, %c0_i32_0 : i32, i32
  }
  func.func @transform_4(%arg0: i32) -> (i32, i32) {
    %c0_i32 = arith.constant 0 : i32
    %c0_i32_0 = arith.constant 0 : i32
    %c0_i32_1 = arith.constant 0 : i32
    return %c0_i32, %c0_i32_0 : i32, i32
  }
  func.func @transform_5(%arg0: i32) -> (i32, i32) {
    %c0_i32 = arith.constant 0 : i32
    %c0_i32_0 = arith.constant 0 : i32
    %c0_i32_1 = arith.constant 0 : i32
    return %c0_i32, %c0_i32_0 : i32, i32
  }
  func.func @transform_6(%arg0: i32) -> (i32, i32) {
    %c0_i32 = arith.constant 0 : i32
    %c0_i32_0 = arith.constant 0 : i32
    %c0_i32_1 = arith.constant 0 : i32
    return %c0_i32, %c0_i32_0 : i32, i32
  }
  func.func @transform_7(%arg0: i32) -> (i32, i32) {
    %c0_i32 = arith.constant 0 : i32
    %c0_i32_0 = arith.constant 0 : i32
    return %arg0, %c0_i32 : i32, i32
  }
}

</mosaic_0001>

<bundles_post_ra>
// kernel: tpu_custom_call.1
= control target key start
LH: loop header
LB: loop body
LE: loop exit
PB: predicated region body
PF: predicated region fallthrough
CT: control target
= control target key end

     0   :  { %vm42_vm0 = vcmask 1043456   ;;  %v440_v0 = vmov 0.0   ;;  %vm441_vm1 = vmmov 0   ;;  %vm38_vm2 = vcmask 64512   ;;  %s577_s1 = inlined_call_operand.vmem [shape: bf16[8,128], index: 1, kind: input, shape index: {}]   ;;  %s578_s0 = inlined_call_operand.vmem [shape: f32[16,8], index: 0, kind: input, shape index: {}]   ;;  %s579_s2 = inlined_call_operand.vmem [shape: bf16[128,128], index: 2, kind: input, shape index: {}]   ;;  %s580_s3 = inlined_call_operand.vmem [shape: bf16[128,8], index: 3, kind: input, shape index: {}]   ;;  %s581_s4 = inlined_call_operand.vmem [shape: f32[1,128], index: 4, kind: input, shape index: {}]   ;;  %s582_s5 = inlined_call_operand.vmem [shape: f32[1,128], index: 5, kind: input, shape index: {}]   ;;  %s583_s6 = inlined_call_operand.vmem [shape: f32[1,8], index: 6, kind: input, shape index: {}]   ;;  %s584_s7 = inlined_call_operand.vmem [shape: bf16[16,8], index: 7, kind: output, shape index: {}]  }
   0x1   :  { %376 = vmatprep.subr.bf16.mxu0 %v440_v0  ;;  %v30_v1 = vld [vmem:[%s577_s1] sm:$0xf]  ;;  %378 = vmatprep.mubr.msk.bf16.mxu0 %vm441_vm1, %v440_v0  ;;  %v28_v3 = vld [vmem:[%s578_s0 + $0x8] sm:$0xff]  ;;  %v426_v8 = vld [vmem:[%s579_s2 + $0x10] sm:$0xff]   ;;  %vm325_vm3 = vcmask 60416  }
   0x2   :  { %v27_v2 = vld [vmem:[%s578_s0] sm:$0xff]  ;;  %v44_v4 = vsel %vm42_vm0, %v30_v1, 0  ;;  %382 = vmatprep.subr.bf16.mxu1 %v440_v0  ;;  %398 = vmatprep.mubr.msk.bf16.mxu1 %vm441_vm1, %v440_v0  ;;  %v425_v7 = vld [vmem:[%s579_s2 + $0x8] sm:$0xff]   ;;  %v427_v9 = vld [vmem:[%s579_s2 + $0x18] sm:$0xff]  }
   0x3   :  { %v29_v5 = vpack.c.bf16 %v28_v3, %v27_v2  ;;  %v424_v6 = vld [vmem:[%s579_s2] sm:$0xff]   ;;  %377 = vmatpush3.bf16.msra.mxu0 %v44_v4  ;;  %v429_v11 = vld [vmem:[%s579_s2 + $0x28] sm:$0xff]   ;;  %v430_v12 = vld [vmem:[%s579_s2 + $0x30] sm:$0xff]  }
   0x4   :  { %383 = vmatpush3.bf16.msra.mxu1 %v424_v6  ;;  %402 = vmatprep.subr.bf16.mxu0 %v440_v0  ;;  %v428_v10 = vld [vmem:[%s579_s2 + $0x20] sm:$0xff]   ;;  %v431_v13 = vld [vmem:[%s579_s2 + $0x38] sm:$0xff]   ;;  %v433_v15 = vld [vmem:[%s580_s3 + $0x8] sm:$0xff]  }
   0x5   :  { %384 = vmatprep.subr.bf16.mxu1 %v440_v0  ;;  %v432_v14 = vld [vmem:[%s580_s3] sm:$0xff]   ;;  %v434_v16 = vld [vmem:[%s580_s3 + $0x10] sm:$0xff]   ;;  %v435_v17 = vld [vmem:[%s580_s3 + $0x18] sm:$0xff]  }
   0x6   :  { %379 = vmatmul.mubr.msk.bf16.vlgmr.msra.gmra.mrb[0].mxu0 %vm38_vm2, %v29_v5  ;;  %v436_v18 = vld [vmem:[%s580_s3 + $0x20] sm:$0xff]   ;;  %v437_v19 = vld [vmem:[%s580_s3 + $0x28] sm:$0xff]   ;;  %v438_v30 = vld [vmem:[%s580_s3 + $0x30] sm:$0xff]  }
   0x7   :  { %418 = vmatprep.mubr.msk.bf16.mxu0 %vm441_vm1, %v440_v0  ;;  %403 = vmatpush3.bf16.msra.mxu0 %v432_v14  ;;  %v332_v20 = vld [vmem:[%s581_s4] ss:$0 sm:$0xff]  ;;  %v439_v31 = vld [vmem:[%s580_s3 + $0x38] sm:$0xff]  }
   0x8   :  { %385 = vmatpush3.bf16.msra.mxu1 %v425_v7  ;;  %404 = vmatprep.subr.bf16.mxu0 %v440_v0  ;;  %v334_v32 = vld [vmem:[%s582_s5] ss:$0 sm:$0xff] }
   0x9   :  { %386 = vmatprep.subr.bf16.mxu1 %v440_v0  ;;  %v343_v42 = vld [vmem:[%s583_s6] ss:$0 sm:$0xff] }
   0xb   :  { %405 = vmatpush3.bf16.msra.mxu0 %v433_v15 }
   0xc   :  { %387 = vmatpush3.bf16.msra.mxu1 %v426_v8  ;;  %406 = vmatprep.subr.bf16.mxu0 %v440_v0 }
   0xd   :  { %388 = vmatprep.subr.bf16.mxu1 %v440_v0 }
   0xf   :  { %407 = vmatpush3.bf16.msra.mxu0 %v434_v16 }
  0x10   :  { %389 = vmatpush3.bf16.msra.mxu1 %v427_v9  ;;  %408 = vmatprep.subr.bf16.mxu0 %v440_v0 }
  0x11   :  { %390 = vmatprep.subr.bf16.mxu1 %v440_v0 }
  0x13   :  { %409 = vmatpush3.bf16.msra.mxu0 %v435_v17 }
  0x14   :  { %391 = vmatpush3.bf16.msra.mxu1 %v428_v10  ;;  %410 = vmatprep.subr.bf16.mxu0 %v440_v0 }
  0x15   :  { %392 = vmatprep.subr.bf16.mxu1 %v440_v0 }
  0x17   :  { %411 = vmatpush3.bf16.msra.mxu0 %v436_v18 }
  0x18   :  { %393 = vmatpush3.bf16.msra.mxu1 %v429_v11  ;;  %412 = vmatprep.subr.bf16.mxu0 %v440_v0 }
  0x19   :  { %394 = vmatprep.subr.bf16.mxu1 %v440_v0 }
  0x1b   :  { %413 = vmatpush3.bf16.msra.mxu0 %v437_v19 }
  0x1c   :  { %395 = vmatpush3.bf16.msra.mxu1 %v430_v12  ;;  %414 = vmatprep.subr.bf16.mxu0 %v440_v0 }
  0x1d   :  { %396 = vmatprep.subr.bf16.mxu1 %v440_v0 }
  0x1f   :  { %415 = vmatpush3.bf16.msra.mxu0 %v438_v30 }
  0x20   :  { %397 = vmatpush3.bf16.msra.mxu1 %v431_v13  ;;  %416 = vmatprep.subr.bf16.mxu0 %v440_v0 }
  0x23   :  { %417 = vmatpush3.bf16.msra.mxu0 %v439_v31 }
  0xd9   :  { %v80_v21 = vpop.f32.mrb[0].mxu0 }
  0xda   :  { %v81_v22 = vadd.f32 %v332_v20, %v80_v21  ;;  %v380_v23 = vpop.f32.mrb[1].mxu0 }
  0xdb   :  { %v83_v24 = vpop.f32.mrb[2].mxu0 }
  0xdc   :  { %v84_v25 = vadd.f32 %v332_v20, %v83_v24  ;;  %v381_v26 = vpop.f32.mrb[3].mxu0  ;;  %v87_v27 = vmax.f32 %v81_v22, 0.0 }
  0xde   :  { %v88_v28 = vmax.f32 %v84_v25, 0.0 }
  0xe0   :  { %v89_v29 = vpack.c.bf16 %v88_v28, %v87_v27 }
  0xe2   :  { %399 = vmatmul.mubr.bf16.vlgmr.msra.gmra.mrb[0].mxu1 %v89_v29 }
 0x1b5   :  { %v195_v33 = vpop.f32.mrb[0].mxu1 }
 0x1b6   :  { %v196_v34 = vadd.f32 %v334_v32, %v195_v33  ;;  %v400_v35 = vpop.f32.mrb[1].mxu1 }
 0x1b7   :  { %v198_v36 = vpop.f32.mrb[2].mxu1 }
 0x1b8   :  { %v199_v37 = vadd.f32 %v334_v32, %v198_v36  ;;  %v401_v38 = vpop.f32.mrb[3].mxu1  ;;  %v202_v39 = vmax.f32 %v196_v34, 0.0 }
 0x1ba   :  { %v203_v40 = vmax.f32 %v199_v37, 0.0 }
 0x1bc   :  { %v204_v41 = vpack.c.bf16 %v203_v40, %v202_v39 }
 0x1be   :  { %419 = vmatmul.mubr.bf16.vlgmr.msra.gmra.mrb[4].mxu0 %v204_v41 }
 0x291   :  { %v310_v43 = vpop.f32.mrb[4].mxu0 }
 0x292   :  { %v311_v44 = vadd.f32 %v343_v42, %v310_v43  ;;  %v420_v45 = vpop.f32.mrb[5].mxu0 }
 0x293   :  { %v313_v46 = vpop.f32.mrb[6].mxu0 }
 0x294   :  { %v354_v47 = vpack.c.bf16 %v311_v44, %v311_v44  ;;  %v314_v48 = vadd.f32 %v343_v42, %v313_v46  ;;  %v421_v49 = vpop.f32.mrb[7].mxu0 }
 0x296   :  { %326 = vst.msk [vmem:[%s584_s7] sm:$0xf] %vm325_vm3, %v354_v47  ;;  %v355_v50 = vpack.c.bf16 %v314_v48, %v314_v48 }
 0x298   :  { %327 = vst.msk [vmem:[%s584_s7 + $0x4] sm:$0xf] %vm325_vm3, %v355_v50 }

</bundles_post_ra>
